<compile_context>
chip_gen: v7x
topology: tpu7x:2x2x1
jax: 0.10.0
libtpu: 0.0.40
codegen_flags: <defaults>
</compile_context>

<pallas_src>
import jax
import jax.numpy as jnp
from jax import lax
from jax.experimental import pallas as pl
from jax.experimental.pallas import tpu as pltpu


def _round_up(x, m):
    return (x + m - 1) // m * m


def lstm_classifier_kernel(x_ref, wih_ref, whh_ref, b_ref, wfc_ref, bfc_ref,
                           out_ref, h_sc, c_sc, gx_sc):
    chunk = pl.program_id(0)
    Bp, Hp = h_sc.shape
    Tc = x_ref.shape[0] // Bp

    @pl.when(chunk == 0)
    def _init():
        h_sc[...] = jnp.zeros_like(h_sc)
        c_sc[...] = jnp.zeros_like(c_sc)

    # Hoisted input projection for the whole chunk: one MXU-friendly matmul,
    # bf16 operands, f32 accumulation, LSTM bias folded in.
    gx_sc[...] = (
        jnp.dot(x_ref[...].astype(jnp.bfloat16), wih_ref[...],
                preferred_element_type=jnp.float32)
        + b_ref[...])

    whh = whh_ref[...]  # (Hp, 4Hp) bf16, hoisted out of the time loop

    def step(t, carry):
        h, c = carry
        row = pl.multiple_of(t * Bp, Bp)
        gates = gx_sc[pl.ds(row, Bp), :] + jnp.dot(
            h.astype(jnp.bfloat16), whh, preferred_element_type=jnp.float32)
        # Gate-major layout, each gate occupies a whole Hp (=k*128) lane block:
        # static, tile-aligned slices.  PyTorch order: i, f, g, o.
        i_g = jax.nn.sigmoid(gates[:, 0 * Hp:1 * Hp])
        f_g = jax.nn.sigmoid(gates[:, 1 * Hp:2 * Hp])
        g_g = jnp.tanh(gates[:, 2 * Hp:3 * Hp])
        o_g = jax.nn.sigmoid(gates[:, 3 * Hp:4 * Hp])
        c_new = f_g * c + i_g * g_g
        h_new = o_g * jnp.tanh(c_new)
        return h_new, c_new

    h_fin, c_fin = lax.fori_loop(0, Tc, step, (h_sc[...], c_sc[...]),
                                 unroll=True)
    h_sc[...] = h_fin
    c_sc[...] = c_fin

    @pl.when(chunk == pl.num_programs(0) - 1)
    def _finalize():
        # fc on the last hidden state, then LogSoftmax over dim=1 (classes).
        # (Output is written once; O is left unpadded — pad O toward 128 for a
        #  lane-dense store if the classifier head is written per chunk.)
        logits = (jnp.dot(h_fin.astype(jnp.bfloat16), wfc_ref[...],
                          preferred_element_type=jnp.float32)
                  + bfc_ref[...])
        m = jnp.max(logits, axis=1, keepdims=True)
        z = logits - m
        lse = jnp.log(jnp.sum(jnp.exp(z), axis=1, keepdims=True))
        out_ref[...] = (z - lse).astype(out_ref.dtype)


def prepare_params(w_ih, w_hh, b_ih, b_hh, w_fc, b_fc):
    """One-time parameter preprocessing (transpose, pad, bias-fold, bf16 cast).

    Weights use PyTorch nn.LSTM / nn.Linear shapes:
      w_ih (4H, I), w_hh (4H, H), b_ih/b_hh (4H,), w_fc (O, H), b_fc (O,).
    """
    H4, _ = w_ih.shape
    I = w_ih.shape[1]
    H = H4 // 4
    O = w_fc.shape[0]
    Hp = _round_up(H, 128)  # lane-aligned gate width

    wih_t = jnp.zeros((I, 4 * Hp), jnp.float32)
    whh_t = jnp.zeros((Hp, 4 * Hp), jnp.float32)
    bias = jnp.zeros((1, 4 * Hp), jnp.float32)
    b_sum = b_ih + b_hh
    for k in range(4):  # PyTorch gate order i, f, g, o -> gate-major columns
        wih_t = wih_t.at[:, k * Hp:k * Hp + H].set(w_ih[k * H:(k + 1) * H, :].T)
        whh_t = whh_t.at[:H, k * Hp:k * Hp + H].set(w_hh[k * H:(k + 1) * H, :].T)
        bias = bias.at[:, k * Hp:k * Hp + H].set(b_sum[k * H:(k + 1) * H][None, :])
    wfc_t = jnp.zeros((Hp, O), jnp.float32).at[:H, :].set(w_fc.T)
    bfc_r = b_fc.reshape(1, O).astype(jnp.float32)

    return dict(
        wih_t=wih_t.astype(jnp.bfloat16),   # (I, 4Hp)
        whh_t=whh_t.astype(jnp.bfloat16),   # (Hp, 4Hp)
        bias=bias,                          # (1, 4Hp) f32 (added post-acc)
        wfc_t=wfc_t.astype(jnp.bfloat16),   # (Hp, O)
        bfc=bfc_r,                          # (1, O)
        H=H, Hp=Hp, O=O,
    )


def lstm_classifier_fwd(params, x, *, time_chunk=None):
    """x: (T, B, I) float32 (time-major, like PyTorch nn.LSTM default)."""
    T, B, I = x.shape
    Hp, O = params["Hp"], params["O"]
    Bp = _round_up(max(B, 8), 8)          # sublane-aligned batch
    Tc = T if time_chunk is None else time_chunk
    assert T % Tc == 0, "T must be divisible by time_chunk"
    num_chunks = T // Tc

    # Pad batch and flatten time into rows so the hoisted input projection is
    # one large (Tc*Bp, I) x (I, 4Hp) matmul per chunk.
    x_p = jnp.zeros((T, Bp, I), x.dtype).at[:, :B, :].set(x)
    x2d = x_p.reshape(T * Bp, I)

    grid_spec = pltpu.PrefetchScalarGridSpec(
        num_scalar_prefetch=0,
        grid=(num_chunks,),
        in_specs=[
            pl.BlockSpec((Tc * Bp, I), lambda c: (c, 0)),     # x chunk (rows)
            pl.BlockSpec((I, 4 * Hp), lambda c: (0, 0)),      # W_ih^T (bf16)
            pl.BlockSpec((Hp, 4 * Hp), lambda c: (0, 0)),     # W_hh^T (bf16)
            pl.BlockSpec((1, 4 * Hp), lambda c: (0, 0)),      # b_ih + b_hh
            pl.BlockSpec((Hp, O), lambda c: (0, 0)),          # W_fc^T (bf16)
            pl.BlockSpec((1, O), lambda c: (0, 0)),           # b_fc
        ],
        out_specs=pl.BlockSpec((Bp, O), lambda c: (0, 0)),    # resident output
        scratch_shapes=[
            pltpu.VMEM((Bp, Hp), jnp.float32),                # h state
            pltpu.VMEM((Bp, Hp), jnp.float32),                # c state
            pltpu.VMEM((Tc * Bp, 4 * Hp), jnp.float32),       # hoisted x-gates
        ],
    )

    out_p = pl.pallas_call(
        lstm_classifier_kernel,
        out_shape=jax.ShapeDtypeStruct((Bp, O), jnp.float32),
        grid_spec=grid_spec,
        compiler_params=pltpu.CompilerParams(
            dimension_semantics=("arbitrary",),   # recurrence over time chunks
            vmem_limit_bytes=32 * 1024 * 1024,
        ),
    )(x2d, params["wih_t"], params["whh_t"], params["bias"],
      params["wfc_t"], params["bfc"])

    return out_p[:B]  # drop batch padding


def lstm_classifier_ref(x, w_ih, w_hh, b_ih, b_hh, w_fc, b_fc):
    """Pure-JAX f32 reference mirroring PyTorch semantics."""
    T, B, _ = x.shape
    H = w_hh.shape[1]
    h = jnp.zeros((B, H), jnp.float32)
    c = jnp.zeros((B, H), jnp.float32)
    for t in range(T):
        gates = x[t] @ w_ih.T + h @ w_hh.T + b_ih + b_hh
        i_g = jax.nn.sigmoid(gates[:, 0 * H:1 * H])
        f_g = jax.nn.sigmoid(gates[:, 1 * H:2 * H])
        g_g = jnp.tanh(gates[:, 2 * H:3 * H])
        o_g = jax.nn.sigmoid(gates[:, 3 * H:4 * H])
        c = f_g * c + i_g * g_g
        h = o_g * jnp.tanh(c)
    logits = h @ w_fc.T + b_fc
    return jax.nn.log_softmax(logits, axis=1)


if __name__ == "__main__":
    # Small, module-consistent shapes: seq=8, batch=4, input=16, hidden=32, out=8.
    T, B, I, H, O = 8, 4, 16, 32, 8

    key = jax.random.PRNGKey(0)
    ks = jax.random.split(key, 8)
    scale = 0.1
    x = jax.random.normal(ks[0], (T, B, I), dtype=jnp.float32)
    w_ih = scale * jax.random.normal(ks[1], (4 * H, I), dtype=jnp.float32)
    w_hh = scale * jax.random.normal(ks[2], (4 * H, H), dtype=jnp.float32)
    b_ih = scale * jax.random.normal(ks[3], (4 * H,), dtype=jnp.float32)
    b_hh = scale * jax.random.normal(ks[4], (4 * H,), dtype=jnp.float32)
    w_fc = scale * jax.random.normal(ks[5], (O, H), dtype=jnp.float32)
    b_fc = scale * jax.random.normal(ks[6], (O,), dtype=jnp.float32)

    params = prepare_params(w_ih, w_hh, b_ih, b_hh, w_fc, b_fc)  # one-time prep

    # time_chunk=4 -> grid of 2 chunks, exercising the resident h/c carry.
    out = lstm_classifier_fwd(params, x, time_chunk=4)
    out = jax.block_until_ready(out)

    ref = lstm_classifier_ref(x, w_ih, w_hh, b_ih, b_hh, w_fc, b_fc)
    assert out.shape == (B, O)
    # bf16 MXU operands (f32 accumulation) vs the pure-f32 reference.
    assert jnp.allclose(out, ref, atol=1e-2, rtol=1e-2), "mismatch vs reference"

    print("KERNEL_OK")
</pallas_src>

<mosaic_0001>
module attributes {stable_mosaic.version = 11 : i64} {
  func.func @lstm_classifier_kernel(%arg0: i32, %arg1: memref<32x16xf32, #tpu.memory_space<vmem>>, %arg2: memref<16x512xbf16, #tpu.memory_space<vmem>>, %arg3: memref<128x512xbf16, #tpu.memory_space<vmem>>, %arg4: memref<1x512xf32, #tpu.memory_space<vmem>>, %arg5: memref<128x8xbf16, #tpu.memory_space<vmem>>, %arg6: memref<1x8xf32, #tpu.memory_space<vmem>>, %arg7: memref<8x8xf32, #tpu.memory_space<vmem>>, %arg8: memref<8x128xf32, #tpu.memory_space<vmem>>, %arg9: memref<8x128xf32, #tpu.memory_space<vmem>>, %arg10: memref<32x512xf32, #tpu.memory_space<vmem>>) attributes {dimension_semantics = [#tpu.dimension_semantics<arbitrary>], iteration_bounds = array<i64: 2>, scalar_prefetch = 0 : i64, scratch_operands = 3 : i64, tpu.core_type = #tpu.core_type<tc>, window_params = [{transform_indices = @transform_0, window_bounds = array<i64: 32, 16>}, {pipeline_mode = #tpu.pipeline_mode<synchronous>, transform_indices = @transform_1, window_bounds = array<i64: 16, 512>}, {pipeline_mode = #tpu.pipeline_mode<synchronous>, transform_indices = @transform_2, window_bounds = array<i64: 128, 512>}, {pipeline_mode = #tpu.pipeline_mode<synchronous>, transform_indices = @transform_3, window_bounds = array<i64: 1, 512>}, {pipeline_mode = #tpu.pipeline_mode<synchronous>, transform_indices = @transform_4, window_bounds = array<i64: 128, 8>}, {pipeline_mode = #tpu.pipeline_mode<synchronous>, transform_indices = @transform_5, window_bounds = array<i64: 1, 8>}, {pipeline_mode = #tpu.pipeline_mode<synchronous>, transform_indices = @transform_6, window_bounds = array<i64: 8, 8>}]} {
    %c0_i32 = arith.constant 0 : i32
    %0 = arith.cmpi eq, %arg0, %c0_i32 : i32
    %1 = arith.extui %0 : i1 to i32
    %c0_i32_0 = arith.constant 0 : i32
    %2 = arith.cmpi ne, %1, %c0_i32_0 : i32
    scf.if %2 {
      %cst_44 = arith.constant 0.000000e+00 : f32
      %147 = vector.broadcast %cst_44 : f32 to vector<8x128xf32>
      %c0_45 = arith.constant 0 : index
      %c0_46 = arith.constant 0 : index
      %148 = vector.load %arg8[%c0_45, %c0_46] : memref<8x128xf32, #tpu.memory_space<vmem>>, vector<8x128xf32>
      tpu.vector_store %arg8[%c0_45, %c0_46], %147 {strides = array<i32>} : memref<8x128xf32, #tpu.memory_space<vmem>>, vector<8x128xf32>,
      %cst_47 = arith.constant 0.000000e+00 : f32
      %149 = vector.broadcast %cst_47 : f32 to vector<8x128xf32>
      %c0_48 = arith.constant 0 : index
      %c0_49 = arith.constant 0 : index
      %150 = vector.load %arg9[%c0_48, %c0_49] : memref<8x128xf32, #tpu.memory_space<vmem>>, vector<8x128xf32>
      tpu.vector_store %arg9[%c0_48, %c0_49], %149 {strides = array<i32>} : memref<8x128xf32, #tpu.memory_space<vmem>>, vector<8x128xf32>,
    } else {
    }
    %c0 = arith.constant 0 : index
    %c0_1 = arith.constant 0 : index
    %3 = vector.load %arg1[%c0, %c0_1] : memref<32x16xf32, #tpu.memory_space<vmem>>, vector<32x16xf32>
    %4 = arith.truncf %3 : vector<32x16xf32> to vector<32x16xbf16>
    %c0_2 = arith.constant 0 : index
    %c0_3 = arith.constant 0 : index
    %5 = vector.load %arg2[%c0_2, %c0_3] : memref<16x512xbf16, #tpu.memory_space<vmem>>, vector<16x512xbf16>
    %cst = arith.constant dense<0.000000e+00> : vector<32x512xf32>
    %6 = tpu.matmul %4, %5, %cst {dimension_numbers = #tpu.dot_dimension_numbers<[1], [0], [0], [1], [0, 0, 1, 1], [], []>} : vector<32x16xbf16>, vector<16x512xbf16>, vector<32x512xf32> -> vector<32x512xf32>
    %c0_4 = arith.constant 0 : index
    %c0_5 = arith.constant 0 : index
    %7 = vector.load %arg4[%c0_4, %c0_5] : memref<1x512xf32, #tpu.memory_space<vmem>>, vector<1x512xf32>
    %8 = vector.broadcast %7 : vector<1x512xf32> to vector<32x512xf32>
    %9 = arith.addf %6, %8 : vector<32x512xf32>
    %c0_6 = arith.constant 0 : index
    %c0_7 = arith.constant 0 : index
    %10 = vector.load %arg10[%c0_6, %c0_7] : memref<32x512xf32, #tpu.memory_space<vmem>>, vector<32x512xf32>
    tpu.vector_store %arg10[%c0_6, %c0_7], %9 {strides = array<i32>} : memref<32x512xf32, #tpu.memory_space<vmem>>, vector<32x512xf32>,
    %c0_8 = arith.constant 0 : index
    %c0_9 = arith.constant 0 : index
    %11 = vector.load %arg3[%c0_8, %c0_9] : memref<128x512xbf16, #tpu.memory_space<vmem>>, vector<128x512xbf16>
    %c0_10 = arith.constant 0 : index
    %c0_11 = arith.constant 0 : index
    %12 = vector.load %arg8[%c0_10, %c0_11] : memref<8x128xf32, #tpu.memory_space<vmem>>, vector<8x128xf32>
    %c0_12 = arith.constant 0 : index
    %c0_13 = arith.constant 0 : index
    %13 = vector.load %arg9[%c0_12, %c0_13] : memref<8x128xf32, #tpu.memory_space<vmem>>, vector<8x128xf32>
    %c0_i32_14 = arith.constant 0 : i32
    %c8_i32 = arith.constant 8 : i32
    %14 = arith.muli %c0_i32_14, %c8_i32 : i32
    %15 = tpu.assume_multiple %14, 8 : i32
    %16 = arith.index_cast %15 : i32 to index
    %c0_15 = arith.constant 0 : index
    %17 = vector.load %arg10[%16, %c0_15] : memref<32x512xf32, #tpu.memory_space<vmem>>, vector<8x512xf32>
    %18 = arith.truncf %12 : vector<8x128xf32> to vector<8x128xbf16>
    %cst_16 = arith.constant dense<0.000000e+00> : vector<8x512xf32>
    %19 = tpu.matmul %18, %11, %cst_16 {dimension_numbers = #tpu.dot_dimension_numbers<[1], [0], [0], [1], [0, 0, 1, 1], [], []>} : vector<8x128xbf16>, vector<128x512xbf16>, vector<8x512xf32> -> vector<8x512xf32>
    %20 = arith.addf %17, %19 : vector<8x512xf32>
    %21 = vector.extract_strided_slice %20 {offsets = [0, 0], sizes = [8, 128], strides = [1, 1]} : vector<8x512xf32> to vector<8x128xf32>
    %22 = arith.negf %21 : vector<8x128xf32>
    %23 = math.exp %22 : vector<8x128xf32>
    %cst_17 = arith.constant 1.000000e+00 : f32
    %24 = vector.broadcast %cst_17 : f32 to vector<8x128xf32>
    %25 = arith.addf %24, %23 : vector<8x128xf32>
    %26 = arith.divf %24, %25 : vector<8x128xf32>
    %27 = vector.extract_strided_slice %20 {offsets = [0, 128], sizes = [8, 128], strides = [1, 1]} : vector<8x512xf32> to vector<8x128xf32>
    %28 = arith.negf %27 : vector<8x128xf32>
    %29 = math.exp %28 : vector<8x128xf32>
    %cst_18 = arith.constant 1.000000e+00 : f32
    %30 = vector.broadcast %cst_18 : f32 to vector<8x128xf32>
    %31 = arith.addf %30, %29 : vector<8x128xf32>
    %32 = arith.divf %30, %31 : vector<8x128xf32>
    %33 = vector.extract_strided_slice %20 {offsets = [0, 256], sizes = [8, 128], strides = [1, 1]} : vector<8x512xf32> to vector<8x128xf32>
    %34 = math.tanh %33 : vector<8x128xf32>
    %35 = vector.extract_strided_slice %20 {offsets = [0, 384], sizes = [8, 128], strides = [1, 1]} : vector<8x512xf32> to vector<8x128xf32>
    %36 = arith.negf %35 : vector<8x128xf32>
    %37 = math.exp %36 : vector<8x128xf32>
    %cst_19 = arith.constant 1.000000e+00 : f32
    %38 = vector.broadcast %cst_19 : f32 to vector<8x128xf32>
    %39 = arith.addf %38, %37 : vector<8x128xf32>
    %40 = arith.divf %38, %39 : vector<8x128xf32>
    %41 = arith.mulf %32, %13 : vector<8x128xf32>
    %42 = arith.mulf %26, %34 : vector<8x128xf32>
    %43 = arith.addf %41, %42 : vector<8x128xf32>
    %44 = math.tanh %43 : vector<8x128xf32>
    %45 = arith.mulf %40, %44 : vector<8x128xf32>
    %c1_i32 = arith.constant 1 : i32
    %c8_i32_20 = arith.constant 8 : i32
    %46 = arith.muli %c1_i32, %c8_i32_20 : i32
    %47 = tpu.assume_multiple %46, 8 : i32
    %48 = arith.index_cast %47 : i32 to index
    %c0_21 = arith.constant 0 : index
    %49 = vector.load %arg10[%48, %c0_21] : memref<32x512xf32, #tpu.memory_space<vmem>>, vector<8x512xf32>
    %50 = arith.truncf %45 : vector<8x128xf32> to vector<8x128xbf16>
    %cst_22 = arith.constant dense<0.000000e+00> : vector<8x512xf32>
    %51 = tpu.matmul %50, %11, %cst_22 {dimension_numbers = #tpu.dot_dimension_numbers<[1], [0], [0], [1], [0, 0, 1, 1], [], []>} : vector<8x128xbf16>, vector<128x512xbf16>, vector<8x512xf32> -> vector<8x512xf32>
    %52 = arith.addf %49, %51 : vector<8x512xf32>
    %53 = vector.extract_strided_slice %52 {offsets = [0, 0], sizes = [8, 128], strides = [1, 1]} : vector<8x512xf32> to vector<8x128xf32>
    %54 = arith.negf %53 : vector<8x128xf32>
    %55 = math.exp %54 : vector<8x128xf32>
    %cst_23 = arith.constant 1.000000e+00 : f32
    %56 = vector.broadcast %cst_23 : f32 to vector<8x128xf32>
    %57 = arith.addf %56, %55 : vector<8x128xf32>
    %58 = arith.divf %56, %57 : vector<8x128xf32>
    %59 = vector.extract_strided_slice %52 {offsets = [0, 128], sizes = [8, 128], strides = [1, 1]} : vector<8x512xf32> to vector<8x128xf32>
    %60 = arith.negf %59 : vector<8x128xf32>
    %61 = math.exp %60 : vector<8x128xf32>
    %cst_24 = arith.constant 1.000000e+00 : f32
    %62 = vector.broadcast %cst_24 : f32 to vector<8x128xf32>
    %63 = arith.addf %62, %61 : vector<8x128xf32>
    %64 = arith.divf %62, %63 : vector<8x128xf32>
    %65 = vector.extract_strided_slice %52 {offsets = [0, 256], sizes = [8, 128], strides = [1, 1]} : vector<8x512xf32> to vector<8x128xf32>
    %66 = math.tanh %65 : vector<8x128xf32>
    %67 = vector.extract_strided_slice %52 {offsets = [0, 384], sizes = [8, 128], strides = [1, 1]} : vector<8x512xf32> to vector<8x128xf32>
    %68 = arith.negf %67 : vector<8x128xf32>
    %69 = math.exp %68 : vector<8x128xf32>
    %cst_25 = arith.constant 1.000000e+00 : f32
    %70 = vector.broadcast %cst_25 : f32 to vector<8x128xf32>
    %71 = arith.addf %70, %69 : vector<8x128xf32>
    %72 = arith.divf %70, %71 : vector<8x128xf32>
    %73 = arith.mulf %64, %43 : vector<8x128xf32>
    %74 = arith.mulf %58, %66 : vector<8x128xf32>
    %75 = arith.addf %73, %74 : vector<8x128xf32>
    %76 = math.tanh %75 : vector<8x128xf32>
    %77 = arith.mulf %72, %76 : vector<8x128xf32>
    %c2_i32 = arith.constant 2 : i32
    %c8_i32_26 = arith.constant 8 : i32
    %78 = arith.muli %c2_i32, %c8_i32_26 : i32
    %79 = tpu.assume_multiple %78, 8 : i32
    %80 = arith.index_cast %79 : i32 to index
    %c0_27 = arith.constant 0 : index
    %81 = vector.load %arg10[%80, %c0_27] : memref<32x512xf32, #tpu.memory_space<vmem>>, vector<8x512xf32>
    %82 = arith.truncf %77 : vector<8x128xf32> to vector<8x128xbf16>
    %cst_28 = arith.constant dense<0.000000e+00> : vector<8x512xf32>
    %83 = tpu.matmul %82, %11, %cst_28 {dimension_numbers = #tpu.dot_dimension_numbers<[1], [0], [0], [1], [0, 0, 1, 1], [], []>} : vector<8x128xbf16>, vector<128x512xbf16>, vector<8x512xf32> -> vector<8x512xf32>
    %84 = arith.addf %81, %83 : vector<8x512xf32>
    %85 = vector.extract_strided_slice %84 {offsets = [0, 0], sizes = [8, 128], strides = [1, 1]} : vector<8x512xf32> to vector<8x128xf32>
    %86 = arith.negf %85 : vector<8x128xf32>
    %87 = math.exp %86 : vector<8x128xf32>
    %cst_29 = arith.constant 1.000000e+00 : f32
    %88 = vector.broadcast %cst_29 : f32 to vector<8x128xf32>
    %89 = arith.addf %88, %87 : vector<8x128xf32>
    %90 = arith.divf %88, %89 : vector<8x128xf32>
    %91 = vector.extract_strided_slice %84 {offsets = [0, 128], sizes = [8, 128], strides = [1, 1]} : vector<8x512xf32> to vector<8x128xf32>
    %92 = arith.negf %91 : vector<8x128xf32>
    %93 = math.exp %92 : vector<8x128xf32>
    %cst_30 = arith.constant 1.000000e+00 : f32
    %94 = vector.broadcast %cst_30 : f32 to vector<8x128xf32>
    %95 = arith.addf %94, %93 : vector<8x128xf32>
    %96 = arith.divf %94, %95 : vector<8x128xf32>
    %97 = vector.extract_strided_slice %84 {offsets = [0, 256], sizes = [8, 128], strides = [1, 1]} : vector<8x512xf32> to vector<8x128xf32>
    %98 = math.tanh %97 : vector<8x128xf32>
    %99 = vector.extract_strided_slice %84 {offsets = [0, 384], sizes = [8, 128], strides = [1, 1]} : vector<8x512xf32> to vector<8x128xf32>
    %100 = arith.negf %99 : vector<8x128xf32>
    %101 = math.exp %100 : vector<8x128xf32>
    %cst_31 = arith.constant 1.000000e+00 : f32
    %102 = vector.broadcast %cst_31 : f32 to vector<8x128xf32>
    %103 = arith.addf %102, %101 : vector<8x128xf32>
    %104 = arith.divf %102, %103 : vector<8x128xf32>
    %105 = arith.mulf %96, %75 : vector<8x128xf32>
    %106 = arith.mulf %90, %98 : vector<8x128xf32>
    %107 = arith.addf %105, %106 : vector<8x128xf32>
    %108 = math.tanh %107 : vector<8x128xf32>
    %109 = arith.mulf %104, %108 : vector<8x128xf32>
    %c3_i32 = arith.constant 3 : i32
    %c8_i32_32 = arith.constant 8 : i32
    %110 = arith.muli %c3_i32, %c8_i32_32 : i32
    %111 = tpu.assume_multiple %110, 8 : i32
    %112 = arith.index_cast %111 : i32 to index
    %c0_33 = arith.constant 0 : index
    %113 = vector.load %arg10[%112, %c0_33] : memref<32x512xf32, #tpu.memory_space<vmem>>, vector<8x512xf32>
    %114 = arith.truncf %109 : vector<8x128xf32> to vector<8x128xbf16>
    %cst_34 = arith.constant dense<0.000000e+00> : vector<8x512xf32>
    %115 = tpu.matmul %114, %11, %cst_34 {dimension_numbers = #tpu.dot_dimension_numbers<[1], [0], [0], [1], [0, 0, 1, 1], [], []>} : vector<8x128xbf16>, vector<128x512xbf16>, vector<8x512xf32> -> vector<8x512xf32>
    %116 = arith.addf %113, %115 : vector<8x512xf32>
    %117 = vector.extract_strided_slice %116 {offsets = [0, 0], sizes = [8, 128], strides = [1, 1]} : vector<8x512xf32> to vector<8x128xf32>
    %118 = arith.negf %117 : vector<8x128xf32>
    %119 = math.exp %118 : vector<8x128xf32>
    %cst_35 = arith.constant 1.000000e+00 : f32
    %120 = vector.broadcast %cst_35 : f32 to vector<8x128xf32>
    %121 = arith.addf %120, %119 : vector<8x128xf32>
    %122 = arith.divf %120, %121 : vector<8x128xf32>
    %123 = vector.extract_strided_slice %116 {offsets = [0, 128], sizes = [8, 128], strides = [1, 1]} : vector<8x512xf32> to vector<8x128xf32>
    %124 = arith.negf %123 : vector<8x128xf32>
    %125 = math.exp %124 : vector<8x128xf32>
    %cst_36 = arith.constant 1.000000e+00 : f32
    %126 = vector.broadcast %cst_36 : f32 to vector<8x128xf32>
    %127 = arith.addf %126, %125 : vector<8x128xf32>
    %128 = arith.divf %126, %127 : vector<8x128xf32>
    %129 = vector.extract_strided_slice %116 {offsets = [0, 256], sizes = [8, 128], strides = [1, 1]} : vector<8x512xf32> to vector<8x128xf32>
    %130 = math.tanh %129 : vector<8x128xf32>
    %131 = vector.extract_strided_slice %116 {offsets = [0, 384], sizes = [8, 128], strides = [1, 1]} : vector<8x512xf32> to vector<8x128xf32>
    %132 = arith.negf %131 : vector<8x128xf32>
    %133 = math.exp %132 : vector<8x128xf32>
    %cst_37 = arith.constant 1.000000e+00 : f32
    %134 = vector.broadcast %cst_37 : f32 to vector<8x128xf32>
    %135 = arith.addf %134, %133 : vector<8x128xf32>
    %136 = arith.divf %134, %135 : vector<8x128xf32>
    %137 = arith.mulf %128, %107 : vector<8x128xf32>
    %138 = arith.mulf %122, %130 : vector<8x128xf32>
    %139 = arith.addf %137, %138 : vector<8x128xf32>
    %140 = math.tanh %139 : vector<8x128xf32>
    %141 = arith.mulf %136, %140 : vector<8x128xf32>
    %c4_i32 = arith.constant 4 : i32
    %c0_38 = arith.constant 0 : index
    %c0_39 = arith.constant 0 : index
    %142 = vector.load %arg8[%c0_38, %c0_39] : memref<8x128xf32, #tpu.memory_space<vmem>>, vector<8x128xf32>
    tpu.vector_store %arg8[%c0_38, %c0_39], %141 {strides = array<i32>} : memref<8x128xf32, #tpu.memory_space<vmem>>, vector<8x128xf32>,
    %c0_40 = arith.constant 0 : index
    %c0_41 = arith.constant 0 : index
    %143 = vector.load %arg9[%c0_40, %c0_41] : memref<8x128xf32, #tpu.memory_space<vmem>>, vector<8x128xf32>
    tpu.vector_store %arg9[%c0_40, %c0_41], %139 {strides = array<i32>} : memref<8x128xf32, #tpu.memory_space<vmem>>, vector<8x128xf32>,
    %c1_i32_42 = arith.constant 1 : i32
    %144 = arith.cmpi eq, %arg0, %c1_i32_42 : i32
    %145 = arith.extui %144 : i1 to i32
    %c0_i32_43 = arith.constant 0 : i32
    %146 = arith.cmpi ne, %145, %c0_i32_43 : i32
    scf.if %146 {
      %147 = arith.truncf %141 : vector<8x128xf32> to vector<8x128xbf16>
      %c0_44 = arith.constant 0 : index
      %c0_45 = arith.constant 0 : index
      %148 = vector.load %arg5[%c0_44, %c0_45] : memref<128x8xbf16, #tpu.memory_space<vmem>>, vector<128x8xbf16>
      %cst_46 = arith.constant dense<0.000000e+00> : vector<8x8xf32>
      %149 = tpu.matmul %147, %148, %cst_46 {dimension_numbers = #tpu.dot_dimension_numbers<[1], [0], [0], [1], [0, 0, 1, 1], [], []>} : vector<8x128xbf16>, vector<128x8xbf16>, vector<8x8xf32> -> vector<8x8xf32>
      %c0_47 = arith.constant 0 : index
      %c0_48 = arith.constant 0 : index
      %150 = vector.load %arg6[%c0_47, %c0_48] : memref<1x8xf32, #tpu.memory_space<vmem>>, vector<1x8xf32>
      %151 = vector.broadcast %150 : vector<1x8xf32> to vector<8x8xf32>
      %152 = arith.addf %149, %151 : vector<8x8xf32>
      %cst_49 = arith.constant dense<0xFF800000> : vector<8xf32>
      %153 = vector.multi_reduction <maximumf>, %152, %cst_49 [1] : vector<8x8xf32> to vector<8xf32>
      %154 = vector.shape_cast %153 : vector<8xf32> to vector<8x1xf32>
      %155 = vector.broadcast %154 : vector<8x1xf32> to vector<8x8xf32>
      %156 = arith.subf %152, %155 : vector<8x8xf32>
      %157 = math.exp %156 : vector<8x8xf32>
      %cst_50 = arith.constant dense<0.000000e+00> : vector<8xf32>
      %158 = vector.multi_reduction <add>, %157, %cst_50 [1] : vector<8x8xf32> to vector<8xf32>
      %159 = vector.shape_cast %158 : vector<8xf32> to vector<8x1xf32>
      %160 = math.log %159 : vector<8x1xf32>
      %161 = vector.broadcast %160 : vector<8x1xf32> to vector<8x8xf32>
      %162 = arith.subf %156, %161 : vector<8x8xf32>
      %c0_51 = arith.constant 0 : index
      %c0_52 = arith.constant 0 : index
      %163 = vector.load %arg7[%c0_51, %c0_52] : memref<8x8xf32, #tpu.memory_space<vmem>>, vector<8x8xf32>
      tpu.vector_store %arg7[%c0_51, %c0_52], %162 {strides = array<i32>} : memref<8x8xf32, #tpu.memory_space<vmem>>, vector<8x8xf32>,
    } else {
    }
    return
  }
  func.func @transform_0(%arg0: i32) -> (i32, i32) {
    %c0_i32 = arith.constant 0 : i32
    %c0_i32_0 = arith.constant 0 : i32
    return %arg0, %c0_i32 : i32, i32
  }
  func.func @transform_1(%arg0: i32) -> (i32, i32) {
    %c0_i32 = arith.constant 0 : i32
    %c0_i32_0 = arith.constant 0 : i32
    %c0_i32_1 = arith.constant 0 : i32
    return %c0_i32, %c0_i32_0 : i32, i32
  }
  func.func @transform_2(%arg0: i32) -> (i32, i32) {
    %c0_i32 = arith.constant 0 : i32
    %c0_i32_0 = arith.constant 0 : i32
    %c0_i32_1 = arith.constant 0 : i32
    return %c0_i32, %c0_i32_0 : i32, i32
  }
  func.func @transform_3(%arg0: i32) -> (i32, i32) {
    %c0_i32 = arith.constant 0 : i32
    %c0_i32_0 = arith.constant 0 : i32
    %c0_i32_1 = arith.constant 0 : i32
    return %c0_i32, %c0_i32_0 : i32, i32
  }
  func.func @transform_4(%arg0: i32) -> (i32, i32) {
    %c0_i32 = arith.constant 0 : i32
    %c0_i32_0 = arith.constant 0 : i32
    %c0_i32_1 = arith.constant 0 : i32
    return %c0_i32, %c0_i32_0 : i32, i32
  }
  func.func @transform_5(%arg0: i32) -> (i32, i32) {
    %c0_i32 = arith.constant 0 : i32
    %c0_i32_0 = arith.constant 0 : i32
    %c0_i32_1 = arith.constant 0 : i32
    return %c0_i32, %c0_i32_0 : i32, i32
  }
  func.func @transform_6(%arg0: i32) -> (i32, i32) {
    %c0_i32 = arith.constant 0 : i32
    %c0_i32_0 = arith.constant 0 : i32
    %c0_i32_1 = arith.constant 0 : i32
    return %c0_i32, %c0_i32_0 : i32, i32
  }
}

</mosaic_0001>

<bundles_post_ra>
// kernel: tpu_custom_call.1
= control target key start
LH: loop header
LB: loop body
LE: loop exit
PB: predicated region body
PF: predicated region fallthrough
CT: control target
= control target key end

     0   :  { %11 = vsyncpa [#allocation6], 0  ;;  %s2063_s0 = inlined_call_operand.vmem [shape: f32[64,16], index: 0, kind: input, shape index: {}]   ;;  %s2064_s1 = inlined_call_operand.vmem [shape: bf16[16,512], index: 1, kind: input, shape index: {}]   ;;  %s2065_s2 = inlined_call_operand.hbm [shape: bf16[128,512], index: 2, kind: input, shape index: {}]   ;;  %s2066_s3 = inlined_call_operand.vmem [shape: f32[1,512], index: 3, kind: input, shape index: {}]   ;;  %s2067_s4 = inlined_call_operand.vmem [shape: bf16[128,8], index: 4, kind: input, shape index: {}]   ;;  %s2068_s5 = inlined_call_operand.vmem [shape: f32[1,8], index: 5, kind: input, shape index: {}]   ;;  %s2069_s6 = inlined_call_operand.hbm [shape: f32[8,8], index: 6, kind: output, shape index: {}]  }
   0x1   :  { %12 = vsyncpa [#allocation7], 0  ;;  %s1681_s21 = smov 0  }
   0x2 LB: > { %s1687_s22 = sadd.s32 4294967295, %s1636_s21   ;;  %p1303_p0 = scmp.ge.s32.totalorder %s1636_s21, 1  ;;  %s1636_s21 = sphi %s1681_s21, %s18_s21  }
   0x3   : > { %p175_p1 = scmp.lt.s32.totalorder %s1636_s21, 3  ;;  %s1638_s23 = smov [#allocation5]  }
   0x4   : > { %s190_s24 = sshll.u32 %s1638_s23, 4  ;;  %p2070_p4 = scmp.eq.s32.totalorder %s1687_s22, 0  ;;  %s191_s24 = int_to_ptr.vmem [resolvable:$true] %s190_s24 }
   0x5   : > { %p1692_p3 = pnand %p1303_p0, %p175_p1  ;;  %s1568_s29 = scalar_lea.hbm %s2065_s2, 4096 }
   0x6   : > { %p1569_p7 = scmp.ne.s32.totalorder %s2065_s2, %s1568_s29  ;;  %p1575_p11 = scmp.lt.u32.totalorder %s1568_s29, %s2065_s2 }
   0x7   : > { %s2074_s25 = scalar_select %p1692_p3, 1, 0 }
   0x8   : > { %p1414_p5 = pneg %p1692_p3 }
   0xa   : > { %p1701_p6 = pnand %p2070_p4, %p1414_p5 }
   0xc   : > { %p1570_p8 = pneg %p1701_p6 }
   0xe   : > { %p1571_p9 = pnand %p1570_p8, %p1569_p7 }
  0x10   : > { %p1572_p10 = pneg %p1571_p9 }
  0x12   : > { %p1577_p12 = pnand %p1575_p11, %p1572_p10 }
  0x14   : > { %1580 = shalt.err (!%p1577_p12)
}
  0x15   : > { %s1581_s10 = scalar_lea.vmem %s191_s24, 4096  ;;  %p1589_p5 = scmp.lt.s32.totalorder %s191_s24, %s191_s24 }
  0x16   : > { %p1582_p13 = scmp.ne.s32.totalorder %s191_s24, %s1581_s10  ;;  %p1590_p2 = scmp.lt.s32.totalorder %s1581_s10, %s1581_s10 }
  0x18   : > { %p1584_p0 = pnand %p1582_p13, %p1570_p8  ;;  %p1591_p4 = por %p1590_p2, %p1589_p5 }
  0x1a   : > { %p1585_p1 = pneg %p1584_p0 }
  0x1c   : > { %p1592_p3 = pnand %p1591_p4, %p1585_p1 }
  0x1e   : > { %1595 = shalt.err (!%p1592_p3)
}
  0x1f   : > { %s1639_s11 = smov 256   ;;  %s1640_s12 = smov 16  }
  0x20   : > { %1417 = dma.hbm_to_vmem [thread:$0]  (!%p1701_p6), %s2065_s2, 4096, %s191_s24, [#allocation6], %s1639_s11, %s1639_s11, %s1640_s12  }
  0x21   : > { %p2076_p7 = scmp.ne.s32.totalorder %s2074_s25, 0 }
  0x23   : > { %224 = sbr.rel (%p2076_p7) target bundleno = 1688 (0x698), region = 44 }
  0x2a   : > { %p2077_p9 = scmp.eq.s32.totalorder %s1687_s22, 0 }
  0x2c   : > { %1627 = dma.done.wait (%p2077_p9), [#allocation6], 4096   ;;  %p2078_p8 = pmov %p2077_p9 }
  0x2d   : > { %s1308_s15 = sshll.u32 %s1687_s22, 2  ;;  %p2079_p3 = scmp.ne.s32.totalorder %s1687_s22, 0 }
  0x2e   : > { %1629 = vsyncadd (%p2078_p8), [#allocation6], 4294963200  ;;  %p250_p2 = scmp.lt.s32.totalorder %s1308_s15, 7  ;;  %v1641_v0 = vmov (!%p2079_p3), 0.0  }
  0x2f   : > { %259 = sbr.rel (%p2079_p3) target bundleno = 54 (0x36), region = 52  ;;  %260 = vst [vmem:[#allocation2] sm:$0xff] (!%p2079_p3), %v1641_v0  ;;  %261 = vst [vmem:[#allocation3] sm:$0xff] (!%p2079_p3), %v1641_v0 }
  0x30   : > { %s2096_s15 = smov (!%p250_p2, %s1308_s15), 7 }
  0x31   : > { %s1309_s16 = sshll.u32 %s2096_s15, 3 }
  0x32   : > { %s1731_s19 = scalar_lea.vmem %s2063_s0, %s1309_s16 }
  0x36 PF: > { %v1438_v1 = vld [vmem:[%s2064_s1 + $0x4] ss:$16 sps:$4 sm:$0xff]   ;;  %v1440_v2 = vld [vmem:[%s2064_s1 + $0xc] ss:$16 sps:$4 sm:$0xff]   ;;  %v2072_v3 = vmov 0   ;;  %vm314_vm0 = vcmask 130048   ;;  %v274_v46 = vlaneseq }
  0x37   : > { %353 = vmatprep.mubr.bf16.mxu0 %v2072_v3  ;;  %406 = vmatprep.mubr.bf16.mxu1 %v2072_v3  ;;  %v1442_v4 = vld [vmem:[%s2064_s1] ss:$16 sps:$4 sm:$0xff]   ;;  %v1443_v5 = vld [vmem:[%s2064_s1 + $0x8] ss:$16 sps:$4 sm:$0xff]   ;;  %v1751_v9 = vld [vmem:[#allocation5 + $0x4] ss:$16 sps:$4 sm:$0xff]  }
  0x38   : > { %321 = vmatprep.subr.bf16.mxu0 %v1438_v1  ;;  %v262_v6 = vld [vmem:[%s1731_s19] sm:$0xff]  ;;  %374 = vmatprep.subr.bf16.mxu1 %v1440_v2  ;;  %v263_v7 = vld [vmem:[%s1731_s19 + $0x8] sm:$0xff]  ;;  %v264_v27 = vld [vmem:[%s1731_s19 + $0x10] sm:$0xff]  ;;  %v275_v47 = vshrl.u32 %v274_v46, 7  ;;  %p1363_p4 = scmp.ne.s32.totalorder %s1687_s22, 1 }
  0x39   : > { %322 = vmatpush1.bf16.msra.mxu0 %v1442_v4  ;;  %375 = vmatpush1.bf16.msra.mxu1 %v1443_v5  ;;  %v266_v8 = vpack.c.bf16 %v263_v7, %v262_v6  ;;  %v1753_v10 = vld [vmem:[#allocation5 + $0xc] ss:$16 sps:$4 sm:$0xff]   ;;  %v1755_v11 = vld [vmem:[#allocation5] ss:$16 sps:$4 sm:$0xff]   ;;  %v1757_v12 = vld [vmem:[#allocation5 + $0x8] ss:$16 sps:$4 sm:$0xff]  }
  0x3a   : > { %645 = vmatprep.subr.bf16.mxu0 %v1751_v9  ;;  %v1760_v13 = vld [vmem:[#allocation5 + $0x24] ss:$16 sps:$4 sm:$0xff]   ;;  %686 = vmatprep.subr.bf16.mxu1 %v1753_v10  ;;  %v1764_v14 = vld [vmem:[#allocation5 + $0x2c] ss:$16 sps:$4 sm:$0xff]   ;;  %v1768_v15 = vld [vmem:[#allocation5 + $0x20] ss:$16 sps:$4 sm:$0xff]  }
  0x3b   : > { %v1770_v16 = vld [vmem:[#allocation5 + $0x28] ss:$16 sps:$4 sm:$0xff]   ;;  %v1774_v17 = vld [vmem:[#allocation5 + $0x44] ss:$16 sps:$4 sm:$0xff]   ;;  %v1777_v18 = vld [vmem:[#allocation5 + $0x4c] ss:$16 sps:$4 sm:$0xff]  }
  0x3c   : > { %1315 = vmatmul.mubr.msk.bf16.vlgmr.msra.gmra.mrb[0].mxu0 %vm314_vm0, %v266_v8  ;;  %1317 = vmatmul.mubr.msk.bf16.vlgmr.msra.gmra.mrb[0].mxu1 %vm314_vm0, %v266_v8  ;;  %v1782_v19 = vld [vmem:[#allocation5 + $0x40] ss:$16 sps:$4 sm:$0xff]   ;;  %v1786_v20 = vld [vmem:[#allocation5 + $0x48] ss:$16 sps:$4 sm:$0xff]   ;;  %v1788_v21 = vld [vmem:[#allocation5 + $0x64] ss:$16 sps:$4 sm:$0xff]  }
  0x3d   : > { %646 = vmatpush1.bf16.msra.mxu0 %v1755_v11  ;;  %687 = vmatpush1.bf16.msra.mxu1 %v1757_v12  ;;  %v1791_v22 = vld [vmem:[#allocation5 + $0x6c] ss:$16 sps:$4 sm:$0xff]   ;;  %v1794_v23 = vld [vmem:[#allocation5 + $0x60] ss:$16 sps:$4 sm:$0xff]   ;;  %v1796_v24 = vld [vmem:[#allocation5 + $0x68] ss:$16 sps:$4 sm:$0xff]  }
  0x3e   : > { %647 = vmatprep.subr.bf16.mxu0 %v1760_v13  ;;  %688 = vmatprep.subr.bf16.mxu1 %v1764_v14  ;;  %v1800_v25 = vld [vmem:[#allocation5 + $0x84] ss:$16 sps:$4 sm:$0xff]   ;;  %v1803_v26 = vld [vmem:[#allocation5 + $0x8c] ss:$16 sps:$4 sm:$0xff]   ;;  %v1806_v28 = vld [vmem:[#allocation5 + $0x80] ss:$16 sps:$4 sm:$0xff]  }
  0x3f   : > { %363 = vmatprep.mubr.bf16.mxu0 %v2072_v3  ;;  %416 = vmatprep.mubr.bf16.mxu1 %v2072_v3  ;;  %v265_v29 = vld [vmem:[%s1731_s19 + $0x18] sm:$0xff]  ;;  %v1814_v32 = vld [vmem:[#allocation5 + $0xa4] ss:$16 sps:$4 sm:$0xff]   ;;  %v1823_v34 = vld [vmem:[#allocation5 + $0xa0] ss:$16 sps:$4 sm:$0xff]   ;;  %v276_v48 = vsub.s32 0, %v275_v47 }
  0x40   : > { %v1810_v30 = vld [vmem:[#allocation5 + $0x88] ss:$16 sps:$4 sm:$0xff]   ;;  %v267_v31 = vpack.c.bf16 %v265_v29, %v264_v27  ;;  %v1817_v33 = vld [vmem:[#allocation5 + $0xac] ss:$16 sps:$4 sm:$0xff]   ;;  %v1830_v36 = vld [vmem:[#allocation5 + $0xc4] ss:$16 sps:$4 sm:$0xff]  }
  0x41   : > { %648 = vmatpush1.bf16.msra.mxu0 %v1768_v15  ;;  %689 = vmatpush1.bf16.msra.mxu1 %v1770_v16  ;;  %v1828_v35 = vld [vmem:[#allocation5 + $0xa8] ss:$16 sps:$4 sm:$0xff]   ;;  %v1833_v37 = vld [vmem:[#allocation5 + $0xcc] ss:$16 sps:$4 sm:$0xff]   ;;  %v1836_v38 = vld [vmem:[#allocation5 + $0xc0] ss:$16 sps:$4 sm:$0xff]  }
  0x42   : > { %649 = vmatprep.subr.bf16.mxu0 %v1774_v17  ;;  %690 = vmatprep.subr.bf16.mxu1 %v1777_v18  ;;  %v1840_v39 = vld [vmem:[#allocation5 + $0xc8] ss:$16 sps:$4 sm:$0xff]   ;;  %v1842_v40 = vld [vmem:[#allocation5 + $0xe4] ss:$16 sps:$4 sm:$0xff]   ;;  %v1845_v41 = vld [vmem:[#allocation5 + $0xec] ss:$16 sps:$4 sm:$0xff]  }
  0x43   : > { %v1848_v42 = vld [vmem:[#allocation5 + $0xe0] ss:$16 sps:$4 sm:$0xff]   ;;  %v1852_v44 = vld [vmem:[#allocation5 + $0xe8] ss:$16 sps:$4 sm:$0xff]   ;;  %v284_v50 = vsub.s32 2, %v275_v47  ;;  %v288_v51 = vsub.s32 3, %v275_v47 }
  0x44   : > { %1316 = vmatmul.mubr.msk.bf16.gmra.mrb[4].mxu0 %vm314_vm0, %v267_v31  ;;  %1318 = vmatmul.mubr.msk.bf16.gmra.mrb[4].mxu1 %vm314_vm0, %v267_v31  ;;  %v475_v43 = vld [vmem:[#allocation2] sm:$0xff]  ;;  %v280_v52 = vsub.s32 1, %v275_v47  ;;  %vm1644_vm1 = vmmov (!%p1363_p4), 0   ;;  %vm1227_vm2 = vcmask (!%p1363_p4), 64512  }
  0x45   : > { %650 = vmatpush1.bf16.msra.mxu0 %v1782_v19  ;;  %691 = vmatpush1.bf16.msra.mxu1 %v1786_v20  ;;  %v484_v45 = vpack.c.bf16 %v475_v43, %v475_v43  ;;  %v272_v49 = vld [vmem:[%s2066_s3] sm:$0xf] }
  0x46   : > { %651 = vmatprep.subr.bf16.mxu0 %v1788_v21  ;;  %692 = vmatprep.subr.bf16.mxu1 %v1791_v22  ;;  %v277_v53 = vrot.slane %v272_v49, %v276_v48  ;;  %v285_v55 = vrot.slane %v272_v49, %v284_v50  ;;  %v289_v58 = vrot.slane %v272_v49, %v288_v51 }
  0x47   : > { %677 = vmatprep.mubr.bf16.mxu0 %v2072_v3  ;;  %718 = vmatprep.mubr.bf16.mxu1 %v2072_v3  ;;  %v281_v59 = vrot.slane %v272_v49, %v280_v52 }
  0x49   : > { %652 = vmatpush1.bf16.msra.mxu0 %v1794_v23  ;;  %693 = vmatpush1.bf16.msra.mxu1 %v1796_v24 }
  0x4a   : > { %653 = vmatprep.subr.bf16.mxu0 %v1800_v25  ;;  %694 = vmatprep.subr.bf16.mxu1 %v1803_v26 }
  0x4d   : > { %654 = vmatpush1.bf16.msra.mxu0 %v1806_v28  ;;  %695 = vmatpush1.bf16.msra.mxu1 %v1810_v30 }
  0x4e   : > { %655 = vmatprep.subr.bf16.mxu0 %v1814_v32  ;;  %696 = vmatprep.subr.bf16.mxu1 %v1817_v33 }
  0x51   : > { %656 = vmatpush1.bf16.msra.mxu0 %v1823_v34  ;;  %697 = vmatpush1.bf16.msra.mxu1 %v1828_v35 }
  0x52   : > { %657 = vmatprep.subr.bf16.mxu0 %v1830_v36  ;;  %698 = vmatprep.subr.bf16.mxu1 %v1833_v37 }
  0x55   : > { %658 = vmatpush1.bf16.msra.mxu0 %v1836_v38  ;;  %699 = vmatpush1.bf16.msra.mxu1 %v1840_v39 }
  0x56   : > { %659 = vmatprep.subr.bf16.mxu0 %v1842_v40  ;;  %700 = vmatprep.subr.bf16.mxu1 %v1845_v41 }
  0x59   : > { %660 = vmatpush1.bf16.msra.mxu0 %v1848_v42  ;;  %701 = vmatpush1.bf16.msra.mxu1 %v1852_v44 }
  0x5a   : > { %763 = vmatprep.subr.bf16.mxu0 %v1751_v9  ;;  %804 = vmatprep.subr.bf16.mxu1 %v1753_v10 }
  0x5c   : > { %678 = vmatmul.mubr.bf16.vlgmr.msra.gmra.mrb[8].mxu0 %v484_v45  ;;  %719 = vmatmul.mubr.bf16.vlgmr.msra.gmra.mrb[8].mxu1 %v484_v45 }
  0x5d   : > { %764 = vmatpush1.bf16.msra.mxu0 %v1755_v11  ;;  %805 = vmatpush1.bf16.msra.mxu1 %v1757_v12 }
  0x5e   : > { %765 = vmatprep.subr.bf16.mxu0 %v1760_v13  ;;  %806 = vmatprep.subr.bf16.mxu1 %v1764_v14 }
  0x5f   : > { %795 = vmatprep.mubr.bf16.mxu0 %v2072_v3  ;;  %836 = vmatprep.mubr.bf16.mxu1 %v2072_v3 }
  0x61   : > { %766 = vmatpush1.bf16.msra.mxu0 %v1768_v15  ;;  %807 = vmatpush1.bf16.msra.mxu1 %v1770_v16 }
  0x62   : > { %767 = vmatprep.subr.bf16.mxu0 %v1774_v17  ;;  %808 = vmatprep.subr.bf16.mxu1 %v1777_v18 }
  0x65   : > { %768 = vmatpush1.bf16.msra.mxu0 %v1782_v19  ;;  %809 = vmatpush1.bf16.msra.mxu1 %v1786_v20 }
  0x66   : > { %769 = vmatprep.subr.bf16.mxu0 %v1788_v21  ;;  %810 = vmatprep.subr.bf16.mxu1 %v1791_v22 }
  0x69   : > { %770 = vmatpush1.bf16.msra.mxu0 %v1794_v23  ;;  %811 = vmatpush1.bf16.msra.mxu1 %v1796_v24 }
  0x6a   : > { %771 = vmatprep.subr.bf16.mxu0 %v1800_v25  ;;  %812 = vmatprep.subr.bf16.mxu1 %v1803_v26 }
  0x6d   : > { %772 = vmatpush1.bf16.msra.mxu0 %v1806_v28  ;;  %813 = vmatpush1.bf16.msra.mxu1 %v1810_v30 }
  0x6e   : > { %773 = vmatprep.subr.bf16.mxu0 %v1814_v32  ;;  %814 = vmatprep.subr.bf16.mxu1 %v1817_v33 }
  0x71   : > { %774 = vmatpush1.bf16.msra.mxu0 %v1823_v34  ;;  %815 = vmatpush1.bf16.msra.mxu1 %v1828_v35 }
  0x72   : > { %775 = vmatprep.subr.bf16.mxu0 %v1830_v36  ;;  %816 = vmatprep.subr.bf16.mxu1 %v1833_v37 }
  0x75   : > { %776 = vmatpush1.bf16.msra.mxu0 %v1836_v38  ;;  %817 = vmatpush1.bf16.msra.mxu1 %v1840_v39 }
  0x76   : > { %777 = vmatprep.subr.bf16.mxu0 %v1842_v40  ;;  %818 = vmatprep.subr.bf16.mxu1 %v1845_v41 }
  0x79   : > { %778 = vmatpush1.bf16.msra.mxu0 %v1848_v42  ;;  %819 = vmatpush1.bf16.msra.mxu1 %v1852_v44 }
  0x7a   : > { %881 = vmatprep.subr.bf16.mxu0 %v1751_v9  ;;  %922 = vmatprep.subr.bf16.mxu1 %v1753_v10 }
 0x10f   : > { %v355_v54 = vpop.f32.mrb[0].mxu0  ;;  %v408_v57 = vpop.f32.mrb[0].mxu1 }
 0x110   : > { %v357_v56 = vpop.f32.mrb[1].mxu0  ;;  %v410_v61 = vpop.f32.mrb[1].mxu1 }
 0x111   : > { %v359_v60 = vpop.f32.mrb[2].mxu0  ;;  %v412_v0 = vpop.f32.mrb[2].mxu1 }
 0x112   : > { %v1896_v62 = vadd.f32 %v359_v60, %v277_v53  ;;  %v361_v63 = vpop.f32.mrb[3].mxu0  ;;  %v1900_v2 = vadd.f32 %v412_v0, %v285_v55  ;;  %v414_v4 = vpop.f32.mrb[3].mxu1  ;;  %v358_v0 = vadd.f32 %v357_v56, %v281_v59 }
 0x113   : > { %v1898_v1 = vadd.f32 %v361_v63, %v281_v59  ;;  %v1902_v5 = vadd.f32 %v414_v4, %v289_v58  ;;  %v356_v63 = vadd.f32 %v355_v54, %v277_v53  ;;  %v409_v4 = vadd.f32 %v408_v57, %v285_v55 }
 0x117   : > { %v365_v6 = vpop.f32.mrb[4].mxu0  ;;  %v418_v27 = vpop.f32.mrb[4].mxu1 }
 0x118   : > { %v1904_v7 = vadd.f32 %v365_v6, %v277_v53  ;;  %v367_v8 = vpop.f32.mrb[5].mxu0  ;;  %v1908_v43 = vadd.f32 %v418_v27, %v285_v55  ;;  %v420_v45 = vpop.f32.mrb[5].mxu1 }
 0x119   : > { %v1906_v29 = vadd.f32 %v367_v8, %v281_v59  ;;  %v369_v31 = vpop.f32.mrb[6].mxu0  ;;  %v1912_v48 = vadd.f32 %v420_v45, %v289_v58  ;;  %v422_v49 = vpop.f32.mrb[6].mxu1  ;;  %v411_v8 = vadd.f32 %v410_v61, %v289_v58 }
 0x11a   : > { %2080 = vst [vmem:[#allocation11_spill] sm:$0xff] %v1904_v7  ;;  %2082 = vst [vmem:[#allocation13_spill] sm:$0xff] %v1908_v43  ;;  %v1910_v46 = vadd.f32 %v369_v31, %v277_v53  ;;  %v371_v47 = vpop.f32.mrb[7].mxu0  ;;  %v1916_v51 = vadd.f32 %v422_v49, %v285_v55  ;;  %v424_v52 = vpop.f32.mrb[7].mxu1 }
 0x11b   : > { %2081 = vst [vmem:[#allocation12_spill] sm:$0xff] %v1906_v29  ;;  %2084 = vst [vmem:[#allocation15_spill] sm:$0xff] %v1912_v48  ;;  %v1914_v50 = vadd.f32 %v371_v47, %v281_v59  ;;  %v1918_v60 = vadd.f32 %v424_v52, %v289_v58  ;;  %v476_v59 = vld [vmem:[#allocation3] sm:$0xff] }
 0x11c   : > { %2083 = vst [vmem:[#allocation14_spill] sm:$0xff] %v1910_v46  ;;  %2086 = vst [vmem:[#allocation17_spill] sm:$0xff] %v1916_v51 }
 0x11d   : > { %2085 = vst [vmem:[#allocation16_spill] sm:$0xff] %v1914_v50 }
 0x12f   : > { %v679_v6 = vpop.f32.mrb[8].mxu0  ;;  %v720_v3 = vpop.f32.mrb[8].mxu1 }
 0x130   : > { %v727_v27 = vadd.f32 %v679_v6, %v356_v63  ;;  %v681_v31 = vpop.f32.mrb[9].mxu0  ;;  %v729_v46 = vadd.f32 %v720_v3, %v409_v4  ;;  %v722_v45 = vpop.f32.mrb[9].mxu1 }
 0x131   : > { %v728_v29 = vadd.f32 %v681_v31, %v358_v0  ;;  %v683_v48 = vpop.f32.mrb[10].mxu0  ;;  %v730_v47 = vadd.f32 %v722_v45, %v411_v8  ;;  %v724_v49 = vpop.f32.mrb[10].mxu1  ;;  %v2087_v0 = vmov 0  }
 0x132   : > { %v1351_v43 = vmul.f32 -1.442695, %v727_v27  ;;  %v684_v50 = vpop.f32.mrb[11].mxu0  ;;  %v725_v7 = vpop.f32.mrb[11].mxu1 }
 0x133   : > { %v1352_v51 = vmul.f32 -1.442695, %v728_v29  ;;  %v1353_v53 = vmul.f32 -1.442695, %v730_v47 }
 0x134   : > { %1492 = vpow2.f32 %v1351_v43 }
 0x135   : > { %1494 = vpow2.f32 %v1352_v51 }
 0x136   : > { %1496 = vpow2.f32 %v1353_v53 }
 0x137   : > { %1498 = vtanh.f32 %v729_v46 }
 0x13e   : > { %v1493_v54 = vpop.eup %1492 }
 0x13f   : > { %v1495_v55 = vpop.eup %1494  ;;  %v734_v56 = vadd.f32 1.0, %v1493_v54 }
 0x140   : > { %v740_v57 = vadd.f32 1.0, %v1495_v55  ;;  %v1497_v3 = vpop.eup %1496 }
 0x141   : > { %1500 = vrcp.f32 %v734_v56  ;;  %v1499_v58 = vpop.eup %1498  ;;  %v747_v52 = vadd.f32 1.0, %v1497_v3 }
 0x142   : > { %1502 = vrcp.f32 %v740_v57 }
 0x143   : > { %1504 = vrcp.f32 %v747_v52 }
 0x14b   : > { %v1501_v61 = vpop.eup %1500 }
 0x14c   : > { %v1503_v48 = vpop.eup %1502  ;;  %v751_v50 = vmul.f32 %v1501_v61, %v1499_v58 }
 0x14d   : > { %v750_v29 = vmul.f32 %v1503_v48, %v476_v59  ;;  %v1505_v43 = vpop.eup %1504 }
 0x14f   : > { %v1920_v7 = vadd.f32 %v751_v50, %v750_v29 }
 0x151   : > { %1506 = vtanh.f32 %v1920_v7 }
 0x15b   : > { %v1507_v51 = vpop.eup %1506 }
 0x15c   : > { %v754_v63 = vmul.f32 %v1507_v51, %v1505_v43 }
 0x15e   : > { %v762_v46 = vpack.c.bf16 %v754_v63, %v754_v63 }
 0x160   : > { %796 = vmatmul.mubr.bf16.vlgmr.msra.gmra.mrb[12].mxu0 %v762_v46  ;;  %837 = vmatmul.mubr.bf16.vlgmr.msra.gmra.mrb[12].mxu1 %v762_v46 }
 0x161   : > { %882 = vmatpush1.bf16.msra.mxu0 %v1755_v11  ;;  %923 = vmatpush1.bf16.msra.mxu1 %v1757_v12 }
 0x162   : > { %883 = vmatprep.subr.bf16.mxu0 %v1760_v13  ;;  %924 = vmatprep.subr.bf16.mxu1 %v1764_v14 }
 0x163   : > { %913 = vmatprep.mubr.bf16.mxu0 %v2087_v0  ;;  %954 = vmatprep.mubr.bf16.mxu1 %v2087_v0 }
 0x165   : > { %884 = vmatpush1.bf16.msra.mxu0 %v1768_v15  ;;  %925 = vmatpush1.bf16.msra.mxu1 %v1770_v16 }
 0x166   : > { %885 = vmatprep.subr.bf16.mxu0 %v1774_v17  ;;  %926 = vmatprep.subr.bf16.mxu1 %v1777_v18 }
 0x169   : > { %886 = vmatpush1.bf16.msra.mxu0 %v1782_v19  ;;  %927 = vmatpush1.bf16.msra.mxu1 %v1786_v20 }
 0x16a   : > { %887 = vmatprep.subr.bf16.mxu0 %v1788_v21  ;;  %928 = vmatprep.subr.bf16.mxu1 %v1791_v22 }
 0x16d   : > { %888 = vmatpush1.bf16.msra.mxu0 %v1794_v23  ;;  %929 = vmatpush1.bf16.msra.mxu1 %v1796_v24 }
 0x16e   : > { %889 = vmatprep.subr.bf16.mxu0 %v1800_v25  ;;  %930 = vmatprep.subr.bf16.mxu1 %v1803_v26 }
 0x171   : > { %890 = vmatpush1.bf16.msra.mxu0 %v1806_v28  ;;  %931 = vmatpush1.bf16.msra.mxu1 %v1810_v30 }
 0x172   : > { %891 = vmatprep.subr.bf16.mxu0 %v1814_v32  ;;  %932 = vmatprep.subr.bf16.mxu1 %v1817_v33 }
 0x175   : > { %892 = vmatpush1.bf16.msra.mxu0 %v1823_v34  ;;  %933 = vmatpush1.bf16.msra.mxu1 %v1828_v35 }
 0x176   : > { %893 = vmatprep.subr.bf16.mxu0 %v1830_v36  ;;  %934 = vmatprep.subr.bf16.mxu1 %v1833_v37 }
 0x179   : > { %894 = vmatpush1.bf16.msra.mxu0 %v1836_v38  ;;  %935 = vmatpush1.bf16.msra.mxu1 %v1840_v39 }
 0x17a   : > { %895 = vmatprep.subr.bf16.mxu0 %v1842_v40  ;;  %936 = vmatprep.subr.bf16.mxu1 %v1845_v41 }
 0x17d   : > { %896 = vmatpush1.bf16.msra.mxu0 %v1848_v42  ;;  %937 = vmatpush1.bf16.msra.mxu1 %v1852_v44 }
 0x17e   : > { %999 = vmatprep.subr.bf16.mxu0 %v1751_v9  ;;  %1040 = vmatprep.subr.bf16.mxu1 %v1753_v10 }
 0x233   : > { %v797_v4 = vpop.f32.mrb[12].mxu0  ;;  %v838_v6 = vpop.f32.mrb[12].mxu1 }
 0x234   : > { %v845_v8 = vadd.f32 %v797_v4, %v1896_v62  ;;  %v847_v27 = vadd.f32 %v838_v6, %v1900_v2  ;;  %v799_v31 = vpop.f32.mrb[13].mxu0  ;;  %v840_v45 = vpop.f32.mrb[13].mxu1 }
 0x235   : > { %v846_v47 = vadd.f32 %v799_v31, %v1898_v1  ;;  %v848_v49 = vadd.f32 %v840_v45, %v1902_v5  ;;  %v801_v53 = vpop.f32.mrb[14].mxu0  ;;  %v842_v54 = vpop.f32.mrb[14].mxu1  ;;  %v2092_v45 = vld [vmem:[#allocation14_spill] sm:$0xff] }
 0x236   : > { %v1354_v55 = vmul.f32 -1.442695, %v845_v8  ;;  %v802_v56 = vpop.f32.mrb[15].mxu0  ;;  %v843_v57 = vpop.f32.mrb[15].mxu1 }
 0x237   : > { %v1355_v9 = vmul.f32 -1.442695, %v846_v47  ;;  %v1356_v10 = vmul.f32 -1.442695, %v848_v49  ;;  %v2093_v49 = vld [vmem:[#allocation17_spill] sm:$0xff]  ;;  %v2094_v56 = vld [vmem:[#allocation16_spill] sm:$0xff] }
 0x238   : > { %1508 = vpow2.f32 %v1354_v55 }
 0x239   : > { %1510 = vpow2.f32 %v1355_v9 }
 0x23a   : > { %1512 = vpow2.f32 %v1356_v10 }
 0x23b   : > { %1514 = vtanh.f32 %v847_v27 }
 0x242   : > { %v1509_v3 = vpop.eup %1508 }
 0x243   : > { %v1511_v58 = vpop.eup %1510  ;;  %v852_v62 = vadd.f32 1.0, %v1509_v3 }
 0x244   : > { %v858_v2 = vadd.f32 1.0, %v1511_v58  ;;  %v1513_v1 = vpop.eup %1512 }
 0x245   : > { %1516 = vrcp.f32 %v852_v62  ;;  %v1515_v59 = vpop.eup %1514  ;;  %v865_v50 = vadd.f32 1.0, %v1513_v1 }
 0x246   : > { %1518 = vrcp.f32 %v858_v2 }
 0x247   : > { %1520 = vrcp.f32 %v865_v50 }
 0x24f   : > { %v1517_v5 = vpop.eup %1516 }
 0x250   : > { %v1519_v61 = vpop.eup %1518  ;;  %v869_v48 = vmul.f32 %v1517_v5, %v1515_v59 }
 0x251   : > { %v868_v52 = vmul.f32 %v1519_v61, %v1920_v7  ;;  %v1521_v43 = vpop.eup %1520 }
 0x253   : > { %v1962_v29 = vadd.f32 %v869_v48, %v868_v52 }
 0x255   : > { %1522 = vtanh.f32 %v1962_v29 }
 0x25f   : > { %v1523_v51 = vpop.eup %1522 }
 0x260   : > { %v872_v63 = vmul.f32 %v1523_v51, %v1521_v43 }
 0x262   : > { %v880_v46 = vpack.c.bf16 %v872_v63, %v872_v63 }
 0x264   : > { %914 = vmatmul.mubr.bf16.vlgmr.msra.gmra.mrb[16].mxu0 %v880_v46  ;;  %955 = vmatmul.mubr.bf16.vlgmr.msra.gmra.mrb[16].mxu1 %v880_v46 }
 0x265   : > { %1000 = vmatpush1.bf16.msra.mxu0 %v1755_v11  ;;  %1041 = vmatpush1.bf16.msra.mxu1 %v1757_v12 }
 0x266   : > { %1001 = vmatprep.subr.bf16.mxu0 %v1760_v13  ;;  %1042 = vmatprep.subr.bf16.mxu1 %v1764_v14  ;;  %v2088_v13 = vld [vmem:[#allocation11_spill] sm:$0xff] }
 0x267   : > { %1031 = vmatprep.mubr.bf16.mxu0 %v2087_v0  ;;  %1072 = vmatprep.mubr.bf16.mxu1 %v2087_v0 }
 0x269   : > { %1002 = vmatpush1.bf16.msra.mxu0 %v1768_v15  ;;  %1043 = vmatpush1.bf16.msra.mxu1 %v1770_v16  ;;  %v2089_v15 = vld [vmem:[#allocation13_spill] sm:$0xff] }
 0x26a   : > { %1003 = vmatprep.subr.bf16.mxu0 %v1774_v17  ;;  %1044 = vmatprep.subr.bf16.mxu1 %v1777_v18 }
 0x26d   : > { %1004 = vmatpush1.bf16.msra.mxu0 %v1782_v19  ;;  %1045 = vmatpush1.bf16.msra.mxu1 %v1786_v20  ;;  %v2090_v19 = vld [vmem:[#allocation12_spill] sm:$0xff] }
 0x26e   : > { %1005 = vmatprep.subr.bf16.mxu0 %v1788_v21  ;;  %1046 = vmatprep.subr.bf16.mxu1 %v1791_v22  ;;  %v2091_v21 = vld [vmem:[#allocation15_spill] sm:$0xff] }
 0x271   : > { %1006 = vmatpush1.bf16.msra.mxu0 %v1794_v23  ;;  %1047 = vmatpush1.bf16.msra.mxu1 %v1796_v24 }
 0x272   : > { %1007 = vmatprep.subr.bf16.mxu0 %v1800_v25  ;;  %1048 = vmatprep.subr.bf16.mxu1 %v1803_v26 }
 0x275   : > { %1008 = vmatpush1.bf16.msra.mxu0 %v1806_v28  ;;  %1049 = vmatpush1.bf16.msra.mxu1 %v1810_v30 }
 0x276   : > { %1009 = vmatprep.subr.bf16.mxu0 %v1814_v32  ;;  %1050 = vmatprep.subr.bf16.mxu1 %v1817_v33 }
 0x279   : > { %1010 = vmatpush1.bf16.msra.mxu0 %v1823_v34  ;;  %1051 = vmatpush1.bf16.msra.mxu1 %v1828_v35 }
 0x27a   : > { %1011 = vmatprep.subr.bf16.mxu0 %v1830_v36  ;;  %1052 = vmatprep.subr.bf16.mxu1 %v1833_v37 }
 0x27d   : > { %1012 = vmatpush1.bf16.msra.mxu0 %v1836_v38  ;;  %1053 = vmatpush1.bf16.msra.mxu1 %v1840_v39 }
 0x27e   : > { %1013 = vmatprep.subr.bf16.mxu0 %v1842_v40  ;;  %1054 = vmatprep.subr.bf16.mxu1 %v1845_v41 }
 0x281   : > { %1014 = vmatpush1.bf16.msra.mxu0 %v1848_v42  ;;  %1055 = vmatpush1.bf16.msra.mxu1 %v1852_v44 }
 0x337   : > { %v915_v11 = vpop.f32.mrb[16].mxu0  ;;  %v956_v12 = vpop.f32.mrb[16].mxu1 }
 0x338   : > { %v963_v14 = vadd.f32 %v915_v11, %v2088_v13  ;;  %v965_v16 = vadd.f32 %v956_v12, %v2089_v15  ;;  %v917_v17 = vpop.f32.mrb[17].mxu0  ;;  %v958_v18 = vpop.f32.mrb[17].mxu1  ;;  %v1556_v15 = vld [vmem:[%s2067_s4] sm:$0xff] (!%p1363_p4)  }
 0x339   : > { %v964_v20 = vadd.f32 %v917_v17, %v2090_v19  ;;  %v966_v22 = vadd.f32 %v958_v18, %v2091_v21  ;;  %v919_v23 = vpop.f32.mrb[18].mxu0  ;;  %v960_v24 = vpop.f32.mrb[18].mxu1  ;;  %v1557_v17 = vld [vmem:[%s2067_s4 + $0x8] sm:$0xff] (!%p1363_p4)   ;;  %v1558_v18 = vld [vmem:[%s2067_s4 + $0x10] sm:$0xff] (!%p1363_p4)   ;;  %v1559_v19 = vld [vmem:[%s2067_s4 + $0x18] sm:$0xff] (!%p1363_p4)  }
 0x33a   : > { %v1357_v25 = vmul.f32 -1.442695, %v963_v14  ;;  %v920_v26 = vpop.f32.mrb[19].mxu0  ;;  %v961_v28 = vpop.f32.mrb[19].mxu1  ;;  %v1561_v21 = vld [vmem:[%s2067_s4 + $0x28] sm:$0xff] (!%p1363_p4)   ;;  %v1563_v23 = vld [vmem:[%s2067_s4 + $0x38] sm:$0xff] (!%p1363_p4)  }
 0x33b   : > { %v1358_v30 = vmul.f32 -1.442695, %v964_v20  ;;  %v1359_v32 = vmul.f32 -1.442695, %v966_v22  ;;  %v1560_v20 = vld [vmem:[%s2067_s4 + $0x20] sm:$0xff] (!%p1363_p4)   ;;  %v1562_v22 = vld [vmem:[%s2067_s4 + $0x30] sm:$0xff] (!%p1363_p4)  }
 0x33c   : > { %1524 = vpow2.f32 %v1357_v25  ;;  %v1364_v25 = vld [vmem:[%s2068_s5] ss:$0 sm:$0xff] (!%p1363_p4) }
 0x33d   : > { %1526 = vpow2.f32 %v1358_v30 }
 0x33e   : > { %1528 = vpow2.f32 %v1359_v32 }
 0x33f   : > { %1530 = vtanh.f32 %v965_v16  ;;  %v1643_v16 = vmov (!%p1363_p4), 0.0  }
 0x340   : > { %1386 = vmatprep.subr.bf16.mxu0 (!%p1363_p4), %v1643_v16 }
 0x346   : > { %v1525_v33 = vpop.eup %1524 }
 0x347   : > { %v1527_v34 = vpop.eup %1526  ;;  %v970_v35 = vadd.f32 1.0, %v1525_v33 }
 0x348   : > { %v976_v36 = vadd.f32 1.0, %v1527_v34  ;;  %v1529_v37 = vpop.eup %1528 }
 0x349   : > { %1532 = vrcp.f32 %v970_v35  ;;  %v1531_v38 = vpop.eup %1530  ;;  %v983_v42 = vadd.f32 1.0, %v1529_v37 }
 0x34a   : > { %1534 = vrcp.f32 %v976_v36 }
 0x34b   : > { %1536 = vrcp.f32 %v983_v42 }
 0x353   : > { %v1533_v39 = vpop.eup %1532 }
 0x354   : > { %v1535_v40 = vpop.eup %1534  ;;  %v987_v41 = vmul.f32 %v1533_v39, %v1531_v38 }
 0x355   : > { %v986_v44 = vmul.f32 %v1535_v40, %v1962_v29  ;;  %v1537_v0 = vpop.eup %1536 }
 0x357   : > { %v988_v7 = vadd.f32 %v987_v41, %v986_v44 }
 0x359   : > { %1538 = vtanh.f32 %v988_v7 }
 0x363   : > { %v1539_v4 = vpop.eup %1538 }
 0x364   : > { %v990_v6 = vmul.f32 %v1539_v4, %v1537_v0 }
 0x366   : > { %v998_v8 = vpack.c.bf16 %v990_v6, %v990_v6 }
 0x368   : > { %1032 = vmatmul.mubr.bf16.vlgmr.msra.gmra.mrb[20].mxu0 %v998_v8  ;;  %1073 = vmatmul.mubr.bf16.vlgmr.msra.gmra.mrb[20].mxu1 %v998_v8 }
 0x369   : > { %1387 = vmatpush3.bf16.msra.mxu0 (!%p1363_p4), %v1556_v15  ;;  %1402 = vmatprep.mubr.msk.bf16.mxu0 (!%p1363_p4), %vm1644_vm1, %v1643_v16 }
 0x36a   : > { %1388 = vmatprep.subr.bf16.mxu0 (!%p1363_p4), %v1643_v16 }
 0x36d   : > { %1389 = vmatpush3.bf16.msra.mxu0 (!%p1363_p4), %v1557_v17 }
 0x36e   : > { %1390 = vmatprep.subr.bf16.mxu0 (!%p1363_p4), %v1643_v16 }
 0x371   : > { %1391 = vmatpush3.bf16.msra.mxu0 (!%p1363_p4), %v1558_v18 }
 0x372   : > { %1392 = vmatprep.subr.bf16.mxu0 (!%p1363_p4), %v1643_v16 }
 0x375   : > { %1393 = vmatpush3.bf16.msra.mxu0 (!%p1363_p4), %v1559_v19 }
 0x376   : > { %1394 = vmatprep.subr.bf16.mxu0 (!%p1363_p4), %v1643_v16 }
 0x379   : > { %1395 = vmatpush3.bf16.msra.mxu0 (!%p1363_p4), %v1560_v20 }
 0x37a   : > { %1396 = vmatprep.subr.bf16.mxu0 (!%p1363_p4), %v1643_v16 }
 0x37d   : > { %1397 = vmatpush3.bf16.msra.mxu0 (!%p1363_p4), %v1561_v21 }
 0x37e   : > { %1398 = vmatprep.subr.bf16.mxu0 (!%p1363_p4), %v1643_v16 }
 0x381   : > { %1399 = vmatpush3.bf16.msra.mxu0 (!%p1363_p4), %v1562_v22 }
 0x382   : > { %1400 = vmatprep.subr.bf16.mxu0 (!%p1363_p4), %v1643_v16 }
 0x385   : > { %1401 = vmatpush3.bf16.msra.mxu0 (!%p1363_p4), %v1563_v23 }
 0x43b   : > { %v1033_v27 = vpop.f32.mrb[20].mxu0  ;;  %v1074_v31 = vpop.f32.mrb[20].mxu1 }
 0x43c   : > { %v1081_v47 = vadd.f32 %v1033_v27, %v2092_v45  ;;  %v1083_v53 = vadd.f32 %v1074_v31, %v2093_v49  ;;  %v1035_v54 = vpop.f32.mrb[21].mxu0  ;;  %v1076_v55 = vpop.f32.mrb[21].mxu1 }
 0x43d   : > { %v1082_v57 = vadd.f32 %v1035_v54, %v2094_v56  ;;  %v1084_v9 = vadd.f32 %v1076_v55, %v1918_v60  ;;  %v1037_v10 = vpop.f32.mrb[22].mxu0  ;;  %v1078_v3 = vpop.f32.mrb[22].mxu1 }
 0x43e   : > { %v1360_v58 = vmul.f32 -1.442695, %v1081_v47  ;;  %v1038_v62 = vpop.f32.mrb[23].mxu0  ;;  %v1079_v2 = vpop.f32.mrb[23].mxu1 }
 0x43f   : > { %v1361_v1 = vmul.f32 -1.442695, %v1082_v57  ;;  %v1362_v59 = vmul.f32 -1.442695, %v1084_v9 }
 0x440   : > { %1540 = vpow2.f32 %v1360_v58 }
 0x441   : > { %1542 = vpow2.f32 %v1361_v1 }
 0x442   : > { %1544 = vpow2.f32 %v1362_v59 }
 0x443   : > { %1546 = vtanh.f32 %v1083_v53 }
 0x44a   : > { %v1541_v5 = vpop.eup %1540 }
 0x44b   : > { %v1543_v61 = vpop.eup %1542  ;;  %v1088_v48 = vadd.f32 1.0, %v1541_v5 }
 0x44c   : > { %v1094_v50 = vadd.f32 1.0, %v1543_v61  ;;  %v1545_v52 = vpop.eup %1544 }
 0x44d   : > { %1548 = vrcp.f32 %v1088_v48  ;;  %v1547_v29 = vpop.eup %1546  ;;  %v1101_v63 = vadd.f32 1.0, %v1545_v52 }
 0x44e   : > { %1550 = vrcp.f32 %v1094_v50 }
 0x44f   : > { %1552 = vrcp.f32 %v1101_v63 }
 0x457   : > { %v1549_v60 = vpop.eup %1548 }
 0x458   : > { %v1551_v43 = vpop.eup %1550  ;;  %v1105_v51 = vmul.f32 %v1549_v60, %v1547_v29 }
 0x459   : > { %v1104_v46 = vmul.f32 %v1551_v43, %v988_v7  ;;  %v1553_v12 = vpop.eup %1552 }
 0x45b   : > { %v1106_v11 = vadd.f32 %v1105_v51, %v1104_v46 }
 0x45d   : > { %1554 = vtanh.f32 %v1106_v11  ;;  %1110 = vst [vmem:[#allocation3] sm:$0xff] %v1106_v11 }
 0x464   : > { %1114 = sbr.rel (%p1363_p4) target bundleno = 1663 (0x67f), region = 56 }
 0x467   : > { %v1555_v13 = vpop.eup %1554 }
 0x468   : > { %v1108_v14 = vmul.f32 %v1555_v13, %v1553_v12 }
 0x46a   : > { %1109 = vst [vmem:[#allocation2] sm:$0xff] %v1108_v14  ;;  %v1115_v24 = vpack.c.bf16 (!%p1363_p4), %v1108_v14, %v1108_v14 }
 0x46c   : > { %1403 = vmatmul.mubr.bf16.vlgmr.msra.gmra.mrb[0].mxu0 %v1115_v24 }
 0x53f   : > { %v1221_v26 = vpop.f32.mrb[0].mxu0 }
 0x540   : > { %v1222_v28 = vadd.f32 %v1364_v25, %v1221_v26  ;;  %v1404_v30 = vpop.f32.mrb[1].mxu0 }
 0x541   : > { %v1224_v32 = vpop.f32.mrb[2].mxu0 }
 0x542   : > { %v1405_v33 = vpop.f32.mrb[3].mxu0  ;;  %v1228_v34 = vsel %vm1227_vm2, %v1222_v28, -inf }
 0x543   : > { %1229 = vmax.xlane.f32.xlu0 %v1228_v34 }
 0x5d0   : > { %v1230_v35 = vpop.xlane.xlu0 %1229 }
 0x5d1   : > { %v1231_v36 = vsub.f32 %v1222_v28, %v1230_v35 }
 0x5d3   : > { %v1232_v37 = vmul.f32 1.442695, %v1231_v36 }
 0x5d5   : > { %1564 = vpow2.f32 %v1232_v37 }
 0x5df   : > { %v1565_v38 = vpop.eup %1564 }
 0x5e0   : > { %v1234_v39 = vsel %vm1227_vm2, %v1565_v38, 0.0 }
 0x5e1   : > { %1235 = vadd.xlane.f32.xlu0 %v1234_v39 }
 0x66e   : > { %v1236_v40 = vpop.xlane.xlu0 %1235 }
 0x66f   : > { %1566 = vlog2.f32 %v1236_v40 }
 0x679   : > { %v1567_v41 = vpop.eup %1566 }
 0x67a   : > { %v1238_v42 = vmul.f32 0.6931472, %v1567_v41 }
 0x67c   : > { %v1239_v44 = vsub.f32 %v1231_v36, %v1238_v42 }
 0x67e   : > { %1240 = vst.msk [vmem:[#allocation8] sm:$0xff] %vm1227_vm2, %v1239_v44 }
 0x67f PF: > { %p1420_p6 = scmp.eq.s32.totalorder %s1687_s22, 1  ;;  %s1645_s28 = smov [#allocation8]  }
 0x680   : > { %s1248_s29 = sshll.u32 %s1645_s28, 4  ;;  %s1249_s29 = int_to_ptr.vmem [resolvable:$true] %s1248_s29 }
 0x681   : > { %s1596_s30 = scalar_lea.vmem %s1249_s29, 128  ;;  %p1603_p13 = scmp.lt.s32.totalorder %s1249_s29, %s1249_s29 }
 0x682   : > { %p1597_p10 = scmp.ne.s32.totalorder %s1249_s29, %s1596_s30  ;;  %p1604_p0 = scmp.lt.s32.totalorder %s1596_s30, %s1596_s30 }
 0x684   : > { %p1598_p11 = pnand %p1597_p10, %p1420_p6  ;;  %p1605_p1 = por %p1604_p0, %p1603_p13 }
 0x686   : > { %p1599_p12 = pneg %p1598_p11 }
 0x688   : > { %p1606_p5 = pnand %p1605_p1, %p1599_p12 }
 0x68a   : > { %1609 = shalt.err (!%p1606_p5)
}
 0x68b   : > { %s1610_s9 = scalar_lea.hbm %s2069_s6, 128 }
 0x68c   : > { %p1611_p7 = scmp.ne.s32.totalorder %s2069_s6, %s1610_s9  ;;  %p1616_p2 = scmp.lt.u32.totalorder %s1610_s9, %s2069_s6 }
 0x68e   : > { %p1612_p9 = pnand %p1611_p7, %p1420_p6 }
 0x690   : > { %p1613_p8 = pneg %p1612_p9 }
 0x692   : > { %p1618_p3 = pnand %p1616_p2, %p1613_p8 }
 0x694   : > { %1621 = shalt.err (!%p1618_p3)
}
 0x695   : > { %1411 = dma.vmem_to_hbm [thread:$0]  (%p1420_p6), %s1249_s29, 128, %s2069_s6, [#allocation7]  }
 0x696   : > { %1631 = dma.done.wait (%p1420_p6), [#allocation7], 128  }
 0x697   : > { %1633 = vsyncadd (%p1420_p6), [#allocation7], 4294967168 }
 0x698 PF: > { %s18_s21 = sadd.s32 1, %s1636_s21  }
 0x699   : > { %p15_p4 = scmp.ge.s32.totalorder %s18_s21, 4  }
 0x69b   :  { %17 = sbr.rel (!%p15_p4) target bundleno = 2 (0x2), region = 88 }
 0x6a2   :  { %1261 = vsyncpa [#allocation6], 1 }
 0x6a3   :  { %1263 = vsyncpa [#allocation6 + $0x1], 1 }
 0x6a4   :  { %1264 = vsyncpa [#allocation7], 1 }
 0x6a5   :  { %1266 = vsyncpa [#allocation7 + $0x1], 1 }

</bundles_post_ra>
